<compile_context>
chip_gen: v7x
topology: tpu7x:2x2x1
jax: 0.10.0
libtpu: 0.0.40
codegen_flags: <defaults>
</compile_context>

<pallas_src>
import functools

import jax
import jax.numpy as jnp
from jax import lax
from jax.experimental import pallas as pl
from jax.experimental.pallas import tpu as pltpu

LN_EPS = 1e-5  # PyTorch nn.LayerNorm default


def _layernorm(x, gamma, beta):
    """LayerNorm over the last dim, biased variance (PyTorch semantics).

    Two-pass (mean, then var of centered values) for numerical robustness.
    """
    mu = jnp.mean(x, axis=-1, keepdims=True)
    xc = x - mu
    var = jnp.mean(xc * xc, axis=-1, keepdims=True)
    return xc * lax.rsqrt(var + LN_EPS) * gamma + beta


def critic_kernel(
    state_ref, action_ref,        # per-batch-tile inputs (bt, in) / (bt, na)
    w1_ref, w2a_ref, w2b_ref,     # f32 weights, (in, out) layout; W2 pre-split
    vp_ref,                       # packed small params, (8, P) f32
    out_ref,                      # (1, bt) f32 -> lane-dense row of q values
    *, fc1, fc2,
):
    prec = jax.lax.Precision.HIGHEST

    # Unpack the consolidated small-parameter buffer (rows are lane-dense).
    b1  = vp_ref[0:1, 0:fc1]
    g1  = vp_ref[1:2, 0:fc1]
    bt1 = vp_ref[2:3, 0:fc1]
    b2  = vp_ref[3:4, 0:fc2]
    g2  = vp_ref[4:5, 0:fc2]
    bt2 = vp_ref[5:6, 0:fc2]
    wq  = vp_ref[6:7, 0:fc2]      # q weight as a row -> VPU reduce, no MXU
    bq  = vp_ref[7:8, 0:1]

    # ---- fc1 -> LayerNorm(bn1) -> relu ----
    h1 = jnp.dot(state_ref[...], w1_ref[...],
                 preferred_element_type=jnp.float32, precision=prec) + b1
    h1 = _layernorm(h1, g1, bt1)
    h1 = jnp.maximum(h1, 0.0)

    # ---- fc2 on cat([h1, action], 1), as a split matmul (no concat buffer) ----
    h2 = (jnp.dot(h1, w2a_ref[...],
                  preferred_element_type=jnp.float32, precision=prec)
          + jnp.dot(action_ref[...], w2b_ref[...],
                    preferred_element_type=jnp.float32, precision=prec)
          + b2)
    h2 = _layernorm(h2, g2, bt2)
    h2 = jnp.maximum(h2, 0.0)

    # ---- q head: N=1 -> VPU multiply + lane reduction (skip the MXU) ----
    q = jnp.sum(h2 * wq, axis=-1, keepdims=True) + bq      # (bt, 1)
    # Relayout the column to a lane-dense row (XLU) -> unmasked store.
    out_ref[...] = q.T.astype(out_ref.dtype)               # (1, bt)


def _round_up(x, m):
    return (x + m - 1) // m * m


def _num_tensorcores():
    """Best-effort TensorCore-per-device count (for megacore batch sharding)."""
    try:
        kind = jax.devices()[0].device_kind.lower()
    except Exception:
        return 1
    # v4/v5p are megacore (2 TCs behind one device); v7x has 2 TCs per chip.
    return 2 if any(t in kind for t in ("v7", "v4", "v5p")) else 1


def _choose_batch_tile(B, block_b, n_cores):
    b8 = _round_up(B, 8)
    if n_cores <= 1:
        # Single TC (v5e/v6e): fewest grid steps wins (per-step overhead ~0.35us
        # dominates this tiny kernel).  block_b caps the tile for VMEM safety.
        if b8 <= block_b:
            return b8
        return _round_up(min(block_b, b8), 128)
    # Multi-TC (v7x / megacore): for large batches make sure the "parallel"
    # batch axis has >= n_cores tiles; keep tiles 128-aligned.
    if b8 <= 128 * n_cores:
        return b8 if b8 <= block_b else _round_up(min(block_b, b8), 128)
    per_core = _round_up(-(-b8 // n_cores), 128)
    return _round_up(min(per_core, block_b), 128)


def pack_params(params):
    """One-time (outside jit) conversion of raw params to the kernel layout."""
    fc1 = params["w1"].shape[1]
    fc2 = params["w2"].shape[1]
    P = max(fc1, fc2)

    def row(v):
        v = jnp.asarray(v, jnp.float32).reshape(1, -1)
        return jnp.pad(v, ((0, 0), (0, P - v.shape[1])))

    vp = jnp.concatenate(
        [row(params["b1"]), row(params["g1"]), row(params["bt1"]),
         row(params["b2"]), row(params["g2"]), row(params["bt2"]),
         row(params["wq"]), row(params["bq"])],
        axis=0,
    )  # (8, P) f32, one lane-dense DMA for all small per-feature params

    w2 = jnp.asarray(params["w2"], jnp.float32)
    return dict(
        w1=jnp.asarray(params["w1"], jnp.float32),
        w2a=w2[:fc1],          # (fc1, fc2)
        w2b=w2[fc1:],          # (n_actions, fc2)
        vp=vp,
    )


@functools.partial(jax.jit, static_argnames=("block_b",))
def critic_forward(state, action, packed, *, block_b=1024):
    B, input_dims = state.shape
    n_actions = action.shape[1]
    fc1 = packed["w1"].shape[1]
    fc2 = packed["w2a"].shape[1]
    P = packed["vp"].shape[1]

    bt = _choose_batch_tile(B, block_b, _num_tensorcores())
    Bp = _round_up(B, bt)
    if Bp != B:
        pad = ((0, Bp - B), (0, 0))
        state = jnp.pad(state, pad)
        action = jnp.pad(action, pad)

    kernel = functools.partial(critic_kernel, fc1=fc1, fc2=fc2)

    out = pl.pallas_call(
        kernel,
        out_shape=jax.ShapeDtypeStruct((1, Bp), jnp.float32),
        grid_spec=pltpu.PrefetchScalarGridSpec(
            num_scalar_prefetch=0,
            grid=(Bp // bt,),
            in_specs=[
                pl.BlockSpec((bt, input_dims), lambda i: (i, 0)),   # state
                pl.BlockSpec((bt, n_actions), lambda i: (i, 0)),    # action
                pl.BlockSpec((input_dims, fc1), lambda i: (0, 0)),  # W1
                pl.BlockSpec((fc1, fc2), lambda i: (0, 0)),         # W2a
                pl.BlockSpec((n_actions, fc2), lambda i: (0, 0)),   # W2b
                pl.BlockSpec((8, P), lambda i: (0, 0)),             # packed params
            ],
            out_specs=pl.BlockSpec((1, bt), lambda i: (0, i)),      # lane-dense
        ),
        compiler_params=pltpu.CompilerParams(
            dimension_semantics=("parallel",),   # batch sharding across TCs
        ),
    )(state, action, packed["w1"], packed["w2a"], packed["w2b"], packed["vp"])

    return out[0, :B].reshape(B, 1)


def init_params(key, input_dims, fc1_dims, fc2_dims, n_actions):
    """Deterministic init matching the module's shapes / uniform ranges."""
    ks = jax.random.split(key, 6)
    # PyTorch: f1 = 1/sqrt(fc1.weight.size(0)) = 1/sqrt(fc1_dims)
    f1 = 1.0 / (fc1_dims ** 0.5)
    f2 = 1.0 / (fc2_dims ** 0.5)
    q4 = 0.003

    # weights stored (in, out) so the kernel does x @ W
    w1 = jax.random.uniform(ks[0], (input_dims, fc1_dims), jnp.float32, -f1, f1)
    b1 = jax.random.uniform(ks[1], (fc1_dims,), jnp.float32, -f1, f1)
    w2 = jax.random.uniform(ks[2], (fc1_dims + n_actions, fc2_dims),
                            jnp.float32, -f2, f2)
    b2 = jax.random.uniform(ks[3], (fc2_dims,), jnp.float32, -f2, f2)
    wq = jax.random.uniform(ks[4], (fc2_dims,), jnp.float32, -q4, q4)
    bq = jax.random.uniform(ks[5], (1,), jnp.float32, -q4, q4)

    return dict(
        w1=w1, b1=b1,
        g1=jnp.ones((fc1_dims,), jnp.float32),
        bt1=jnp.zeros((fc1_dims,), jnp.float32),
        w2=w2, b2=b2,
        g2=jnp.ones((fc2_dims,), jnp.float32),
        bt2=jnp.zeros((fc2_dims,), jnp.float32),
        wq=wq, bq=bq,
    )


def reference_forward(state, action, p):
    """Pure-JAX f32 reference (mirrors the PyTorch forward)."""
    def ln(x, g, b):
        mu = jnp.mean(x, -1, keepdims=True)
        var = jnp.mean((x - mu) ** 2, -1, keepdims=True)
        return (x - mu) / jnp.sqrt(var + LN_EPS) * g + b

    h1 = jax.nn.relu(ln(state @ p["w1"] + p["b1"], p["g1"], p["bt1"]))
    cat = jnp.concatenate([h1, action], axis=1)
    h2 = jax.nn.relu(ln(cat @ p["w2"] + p["b2"], p["g2"], p["bt2"]))
    return h2 @ p["wq"].reshape(-1, 1) + p["bq"]


if __name__ == "__main__":
    input_dims, fc1_dims, fc2_dims, n_actions = 16, 32, 32, 4

    key = jax.random.PRNGKey(0)
    kp, ks, ka = jax.random.split(key, 3)
    params = init_params(kp, input_dims, fc1_dims, fc2_dims, n_actions)
    packed = pack_params(params)   # one-time layout prep, outside the jit path

    # ---- small single-tile case ----
    B = 8
    state = jax.random.normal(ks, (B, input_dims), jnp.float32)
    action = jax.random.normal(ka, (B, n_actions), jnp.float32)

    out = critic_forward(state, action, packed)
    jax.block_until_ready(out)
    ref = reference_forward(state, action, params)
    assert out.shape == (B, 1)
    # f32 matmuls (HIGHEST precision) -> tight tolerance vs the f32 reference.
    assert jnp.allclose(out, ref, atol=1e-3, rtol=1e-2), (out, ref)

    # ---- multi-tile case: exercises the batch grid, padding, "parallel" ----
    B2 = 300
    s2 = jax.random.normal(jax.random.PRNGKey(1), (B2, input_dims), jnp.float32)
    a2 = jax.random.normal(jax.random.PRNGKey(2), (B2, n_actions), jnp.float32)
    out2 = critic_forward(s2, a2, packed, block_b=128)
    jax.block_until_ready(out2)
    ref2 = reference_forward(s2, a2, params)
    assert out2.shape == (B2, 1)
    assert jnp.allclose(out2, ref2, atol=1e-3, rtol=1e-2)

    print("KERNEL_OK")
</pallas_src>

<mosaic_0001>
module attributes {stable_mosaic.version = 11 : i64} {
  func.func @critic_kernel(%arg0: i32, %arg1: memref<8x16xf32, #tpu.memory_space<vmem>>, %arg2: memref<8x4xf32, #tpu.memory_space<vmem>>, %arg3: memref<16x32xf32, #tpu.memory_space<vmem>>, %arg4: memref<32x32xf32, #tpu.memory_space<vmem>>, %arg5: memref<4x32xf32, #tpu.memory_space<vmem>>, %arg6: memref<8x32xf32, #tpu.memory_space<vmem>>, %arg7: memref<1x8xf32, #tpu.memory_space<vmem>>) attributes {dimension_semantics = [#tpu.dimension_semantics<parallel>], iteration_bounds = array<i64: 1>, scalar_prefetch = 0 : i64, scratch_operands = 0 : i64, tpu.core_type = #tpu.core_type<tc>, window_params = [{transform_indices = @transform_0, window_bounds = array<i64: 8, 16>}, {transform_indices = @transform_1, window_bounds = array<i64: 8, 4>}, {pipeline_mode = #tpu.pipeline_mode<synchronous>, transform_indices = @transform_2, window_bounds = array<i64: 16, 32>}, {pipeline_mode = #tpu.pipeline_mode<synchronous>, transform_indices = @transform_3, window_bounds = array<i64: 32, 32>}, {pipeline_mode = #tpu.pipeline_mode<synchronous>, transform_indices = @transform_4, window_bounds = array<i64: 4, 32>}, {pipeline_mode = #tpu.pipeline_mode<synchronous>, transform_indices = @transform_5, window_bounds = array<i64: 8, 32>}, {transform_indices = @transform_6, window_bounds = array<i64: 1, 8>}]} {
    %c0 = arith.constant 0 : index
    %c0_0 = arith.constant 0 : index
    %0 = vector.load %arg6[%c0, %c0_0] : memref<8x32xf32, #tpu.memory_space<vmem>>, vector<1x32xf32>
    %c1 = arith.constant 1 : index
    %c0_1 = arith.constant 0 : index
    %1 = vector.load %arg6[%c1, %c0_1] : memref<8x32xf32, #tpu.memory_space<vmem>>, vector<1x32xf32>
    %c2 = arith.constant 2 : index
    %c0_2 = arith.constant 0 : index
    %2 = vector.load %arg6[%c2, %c0_2] : memref<8x32xf32, #tpu.memory_space<vmem>>, vector<1x32xf32>
    %c3 = arith.constant 3 : index
    %c0_3 = arith.constant 0 : index
    %3 = vector.load %arg6[%c3, %c0_3] : memref<8x32xf32, #tpu.memory_space<vmem>>, vector<1x32xf32>
    %c4 = arith.constant 4 : index
    %c0_4 = arith.constant 0 : index
    %4 = vector.load %arg6[%c4, %c0_4] : memref<8x32xf32, #tpu.memory_space<vmem>>, vector<1x32xf32>
    %c5 = arith.constant 5 : index
    %c0_5 = arith.constant 0 : index
    %5 = vector.load %arg6[%c5, %c0_5] : memref<8x32xf32, #tpu.memory_space<vmem>>, vector<1x32xf32>
    %c6 = arith.constant 6 : index
    %c0_6 = arith.constant 0 : index
    %6 = vector.load %arg6[%c6, %c0_6] : memref<8x32xf32, #tpu.memory_space<vmem>>, vector<1x32xf32>
    %c7 = arith.constant 7 : index
    %c0_7 = arith.constant 0 : index
    %7 = vector.load %arg6[%c7, %c0_7] : memref<8x32xf32, #tpu.memory_space<vmem>>, vector<1x1xf32>
    %c0_8 = arith.constant 0 : index
    %c0_9 = arith.constant 0 : index
    %8 = vector.load %arg1[%c0_8, %c0_9] : memref<8x16xf32, #tpu.memory_space<vmem>>, vector<8x16xf32>
    %c0_10 = arith.constant 0 : index
    %c0_11 = arith.constant 0 : index
    %9 = vector.load %arg3[%c0_10, %c0_11] : memref<16x32xf32, #tpu.memory_space<vmem>>, vector<16x32xf32>
    %cst = arith.constant dense<0.000000e+00> : vector<8x32xf32>
    %10 = tpu.matmul %8, %9, %cst {dimension_numbers = #tpu.dot_dimension_numbers<[1], [0], [0], [1], [0, 0, 1, 1], [], []>, precision = #tpu.contract_precision<fp32>} : vector<8x16xf32>, vector<16x32xf32>, vector<8x32xf32> -> vector<8x32xf32>
    %11 = vector.broadcast %0 : vector<1x32xf32> to vector<8x32xf32>
    %12 = arith.addf %10, %11 : vector<8x32xf32>
    %cst_12 = arith.constant dense<0.000000e+00> : vector<8xf32>
    %13 = vector.multi_reduction <add>, %12, %cst_12 [1] : vector<8x32xf32> to vector<8xf32>
    %14 = vector.shape_cast %13 : vector<8xf32> to vector<8x1xf32>
    %cst_13 = arith.constant 3.200000e+01 : f32
    %15 = vector.broadcast %cst_13 : f32 to vector<8x1xf32>
    %16 = arith.divf %14, %15 : vector<8x1xf32>
    %17 = vector.broadcast %16 : vector<8x1xf32> to vector<8x32xf32>
    %18 = arith.subf %12, %17 : vector<8x32xf32>
    %19 = arith.mulf %18, %18 : vector<8x32xf32>
    %cst_14 = arith.constant dense<0.000000e+00> : vector<8xf32>
    %20 = vector.multi_reduction <add>, %19, %cst_14 [1] : vector<8x32xf32> to vector<8xf32>
    %21 = vector.shape_cast %20 : vector<8xf32> to vector<8x1xf32>
    %cst_15 = arith.constant 3.200000e+01 : f32
    %22 = vector.broadcast %cst_15 : f32 to vector<8x1xf32>
    %23 = arith.divf %21, %22 : vector<8x1xf32>
    %cst_16 = arith.constant 9.99999974E-6 : f32
    %24 = vector.broadcast %cst_16 : f32 to vector<8x1xf32>
    %25 = arith.addf %23, %24 : vector<8x1xf32>
    %26 = math.rsqrt %25 : vector<8x1xf32>
    %27 = vector.broadcast %26 : vector<8x1xf32> to vector<8x32xf32>
    %28 = arith.mulf %18, %27 : vector<8x32xf32>
    %29 = vector.broadcast %1 : vector<1x32xf32> to vector<8x32xf32>
    %30 = arith.mulf %28, %29 : vector<8x32xf32>
    %31 = vector.broadcast %2 : vector<1x32xf32> to vector<8x32xf32>
    %32 = arith.addf %30, %31 : vector<8x32xf32>
    %cst_17 = arith.constant 0.000000e+00 : f32
    %33 = vector.broadcast %cst_17 : f32 to vector<8x32xf32>
    %34 = arith.maximumf %32, %33 : vector<8x32xf32>
    %c0_18 = arith.constant 0 : index
    %c0_19 = arith.constant 0 : index
    %35 = vector.load %arg4[%c0_18, %c0_19] : memref<32x32xf32, #tpu.memory_space<vmem>>, vector<32x32xf32>
    %cst_20 = arith.constant dense<0.000000e+00> : vector<8x32xf32>
    %36 = tpu.matmul %34, %35, %cst_20 {dimension_numbers = #tpu.dot_dimension_numbers<[1], [0], [0], [1], [0, 0, 1, 1], [], []>, precision = #tpu.contract_precision<fp32>} : vector<8x32xf32>, vector<32x32xf32>, vector<8x32xf32> -> vector<8x32xf32>
    %c0_21 = arith.constant 0 : index
    %c0_22 = arith.constant 0 : index
    %37 = vector.load %arg2[%c0_21, %c0_22] : memref<8x4xf32, #tpu.memory_space<vmem>>, vector<8x4xf32>
    %c0_23 = arith.constant 0 : index
    %c0_24 = arith.constant 0 : index
    %38 = vector.load %arg5[%c0_23, %c0_24] : memref<4x32xf32, #tpu.memory_space<vmem>>, vector<4x32xf32>
    %cst_25 = arith.constant dense<0.000000e+00> : vector<8x32xf32>
    %39 = tpu.matmul %37, %38, %cst_25 {dimension_numbers = #tpu.dot_dimension_numbers<[1], [0], [0], [1], [0, 0, 1, 1], [], []>, precision = #tpu.contract_precision<fp32>} : vector<8x4xf32>, vector<4x32xf32>, vector<8x32xf32> -> vector<8x32xf32>
    %40 = arith.addf %36, %39 : vector<8x32xf32>
    %41 = vector.broadcast %3 : vector<1x32xf32> to vector<8x32xf32>
    %42 = arith.addf %40, %41 : vector<8x32xf32>
    %cst_26 = arith.constant dense<0.000000e+00> : vector<8xf32>
    %43 = vector.multi_reduction <add>, %42, %cst_26 [1] : vector<8x32xf32> to vector<8xf32>
    %44 = vector.shape_cast %43 : vector<8xf32> to vector<8x1xf32>
    %cst_27 = arith.constant 3.200000e+01 : f32
    %45 = vector.broadcast %cst_27 : f32 to vector<8x1xf32>
    %46 = arith.divf %44, %45 : vector<8x1xf32>
    %47 = vector.broadcast %46 : vector<8x1xf32> to vector<8x32xf32>
    %48 = arith.subf %42, %47 : vector<8x32xf32>
    %49 = arith.mulf %48, %48 : vector<8x32xf32>
    %cst_28 = arith.constant dense<0.000000e+00> : vector<8xf32>
    %50 = vector.multi_reduction <add>, %49, %cst_28 [1] : vector<8x32xf32> to vector<8xf32>
    %51 = vector.shape_cast %50 : vector<8xf32> to vector<8x1xf32>
    %cst_29 = arith.constant 3.200000e+01 : f32
    %52 = vector.broadcast %cst_29 : f32 to vector<8x1xf32>
    %53 = arith.divf %51, %52 : vector<8x1xf32>
    %cst_30 = arith.constant 9.99999974E-6 : f32
    %54 = vector.broadcast %cst_30 : f32 to vector<8x1xf32>
    %55 = arith.addf %53, %54 : vector<8x1xf32>
    %56 = math.rsqrt %55 : vector<8x1xf32>
    %57 = vector.broadcast %56 : vector<8x1xf32> to vector<8x32xf32>
    %58 = arith.mulf %48, %57 : vector<8x32xf32>
    %59 = vector.broadcast %4 : vector<1x32xf32> to vector<8x32xf32>
    %60 = arith.mulf %58, %59 : vector<8x32xf32>
    %61 = vector.broadcast %5 : vector<1x32xf32> to vector<8x32xf32>
    %62 = arith.addf %60, %61 : vector<8x32xf32>
    %cst_31 = arith.constant 0.000000e+00 : f32
    %63 = vector.broadcast %cst_31 : f32 to vector<8x32xf32>
    %64 = arith.maximumf %62, %63 : vector<8x32xf32>
    %65 = vector.broadcast %6 : vector<1x32xf32> to vector<8x32xf32>
    %66 = arith.mulf %64, %65 : vector<8x32xf32>
    %cst_32 = arith.constant dense<0.000000e+00> : vector<8xf32>
    %67 = vector.multi_reduction <add>, %66, %cst_32 [1] : vector<8x32xf32> to vector<8xf32>
    %68 = vector.shape_cast %67 : vector<8xf32> to vector<8x1xf32>
    %69 = vector.broadcast %7 : vector<1x1xf32> to vector<8x1xf32>
    %70 = arith.addf %68, %69 : vector<8x1xf32>
    %71 = tpu.transpose %70, [1, 0] : vector<8x1xf32> -> vector<1x8xf32>
    %c0_33 = arith.constant 0 : index
    %c0_34 = arith.constant 0 : index
    %72 = vector.load %arg7[%c0_33, %c0_34] : memref<1x8xf32, #tpu.memory_space<vmem>>, vector<1x8xf32>
    tpu.vector_store %arg7[%c0_33, %c0_34], %71 {strides = array<i32>} : memref<1x8xf32, #tpu.memory_space<vmem>>, vector<1x8xf32>,
    return
  }
  func.func @transform_0(%arg0: i32) -> (i32, i32) {
    %c0_i32 = arith.constant 0 : i32
    %c0_i32_0 = arith.constant 0 : i32
    return %arg0, %c0_i32 : i32, i32
  }
  func.func @transform_1(%arg0: i32) -> (i32, i32) {
    %c0_i32 = arith.constant 0 : i32
    %c0_i32_0 = arith.constant 0 : i32
    return %arg0, %c0_i32 : i32, i32
  }
  func.func @transform_2(%arg0: i32) -> (i32, i32) {
    %c0_i32 = arith.constant 0 : i32
    %c0_i32_0 = arith.constant 0 : i32
    %c0_i32_1 = arith.constant 0 : i32
    return %c0_i32, %c0_i32_0 : i32, i32
  }
  func.func @transform_3(%arg0: i32) -> (i32, i32) {
    %c0_i32 = arith.constant 0 : i32
    %c0_i32_0 = arith.constant 0 : i32
    %c0_i32_1 = arith.constant 0 : i32
    return %c0_i32, %c0_i32_0 : i32, i32
  }
  func.func @transform_4(%arg0: i32) -> (i32, i32) {
    %c0_i32 = arith.constant 0 : i32
    %c0_i32_0 = arith.constant 0 : i32
    %c0_i32_1 = arith.constant 0 : i32
    return %c0_i32, %c0_i32_0 : i32, i32
  }
  func.func @transform_5(%arg0: i32) -> (i32, i32) {
    %c0_i32 = arith.constant 0 : i32
    %c0_i32_0 = arith.constant 0 : i32
    %c0_i32_1 = arith.constant 0 : i32
    return %c0_i32, %c0_i32_0 : i32, i32
  }
  func.func @transform_6(%arg0: i32) -> (i32, i32) {
    %c0_i32 = arith.constant 0 : i32
    %c0_i32_0 = arith.constant 0 : i32
    return %c0_i32, %arg0 : i32, i32
  }
}

</mosaic_0001>

<bundles_post_ra>
// kernel: critic_forward.1
= control target key start
LH: loop header
LB: loop body
LE: loop exit
PB: predicated region body
PF: predicated region fallthrough
CT: control target
= control target key end

     0   :  { %11 = vsyncpa [#allocation3], 0  ;;  %s2178_s0 = inlined_call_operand.hbm [shape: f32[8,16], index: 0, kind: input, shape index: {}]   ;;  %s2179_s1 = inlined_call_operand.vmem [shape: f32[8,4], index: 1, kind: input, shape index: {}]   ;;  %s2180_s2 = inlined_call_operand.vmem [shape: f32[16,32], index: 2, kind: input, shape index: {}]   ;;  %s2181_s3 = inlined_call_operand.hbm [shape: f32[32,32], index: 3, kind: input, shape index: {}]   ;;  %s2182_s4 = inlined_call_operand.vmem [shape: f32[4,32], index: 4, kind: input, shape index: {}]   ;;  %s2183_s5 = inlined_call_operand.hbm [shape: f32[8,32], index: 5, kind: input, shape index: {}]   ;;  %s2184_s6 = inlined_call_operand.hbm [shape: f32[1,8], index: 6, kind: output, shape index: {}]  }
   0x1   :  { %12 = vsyncpa [#allocation6], 0 }
   0x2   :  { %13 = vsyncpa [#allocation4], 0  ;;  %s1983_s21 = smov [#allocation5]   ;;  %s1889_s25 = scalar_lea.hbm %s2181_s3, 512 }
   0x3   :  { %s33_s22 = sshll.u32 %s1983_s21, 4  ;;  %p1890_p0 = scmp.ne.s32.totalorder %s2181_s3, %s1889_s25  ;;  %s34_s22 = int_to_ptr.vmem [resolvable:$true] %s33_s22 }
   0x4   :  { %p1893_p1 = scmp.lt.u32.totalorder %s1889_s25, %s2181_s3 }
   0x6   :  { %p1895_p2 = pnand %p1893_p1, %p1890_p0 }
   0x8   :  { %1898 = shalt.err (!%p1895_p2)
}
   0x9   :  { %s1899_s30 = scalar_lea.vmem %s34_s22, 512  ;;  %p1904_p4 = scmp.lt.s32.totalorder %s34_s22, %s34_s22 }
   0xa   :  { %p1900_p3 = scmp.ne.s32.totalorder %s34_s22, %s1899_s30  ;;  %p1905_p5 = scmp.lt.s32.totalorder %s1899_s30, %s1899_s30 }
   0xc   :  { %p1906_p6 = por %p1905_p5, %p1904_p4 }
   0xe   :  { %p1907_p7 = pnand %p1906_p6, %p1900_p3 }
  0x10   :  { %1910 = shalt.err (!%p1907_p7)
}
  0x11   :  { %s1984_s7 = smov 128   ;;  %s1985_s8 = smov 8  }
  0x12   :  { %39 = dma.hbm_to_vmem [thread:$0]  %s2181_s3, 512, %s34_s22, [#allocation6], %s1984_s7, %s1984_s7, %s1985_s8  }
  0x13   :  { %s1986_s11 = smov [#allocation2]   ;;  %s1987_s13 = smov [#allocation7]  }
  0x14   :  { %s20_s12 = sshll.u32 %s1986_s11, 4  ;;  %s48_s14 = sshll.u32 %s1987_s13, 4  ;;  %s21_s12 = int_to_ptr.vmem [resolvable:$true] %s20_s12  ;;  %s49_s14 = int_to_ptr.vmem [resolvable:$true] %s48_s14 }
  0x15   :  { %s1911_s17 = scalar_lea.hbm %s2178_s0, 128 }
  0x16   :  { %p1912_p8 = scmp.ne.s32.totalorder %s2178_s0, %s1911_s17  ;;  %p1915_p9 = scmp.lt.u32.totalorder %s1911_s17, %s2178_s0 }
  0x18   :  { %p1917_p10 = pnand %p1915_p9, %p1912_p8 }
  0x1a   :  { %1920 = shalt.err (!%p1917_p10)
}
  0x1b   :  { %s1921_s3 = scalar_lea.vmem %s21_s12, 128  ;;  %p1926_p12 = scmp.lt.s32.totalorder %s21_s12, %s21_s12 }
  0x1c   :  { %p1922_p11 = scmp.ne.s32.totalorder %s21_s12, %s1921_s3  ;;  %p1927_p13 = scmp.lt.s32.totalorder %s1921_s3, %s1921_s3 }
  0x1e   :  { %p1928_p0 = por %p1927_p13, %p1926_p12 }
  0x20   :  { %p1929_p1 = pnand %p1928_p0, %p1922_p11 }
  0x22   :  { %1932 = shalt.err (!%p1929_p1)
}
  0x23   :  { %23 = dma.hbm_to_vmem [thread:$0]  %s2178_s0, 128, %s21_s12, [#allocation3]  }
  0x24   :  { %s1933_s26 = scalar_lea.hbm %s2183_s5, 128 }
  0x25   :  { %p1934_p2 = scmp.ne.s32.totalorder %s2183_s5, %s1933_s26  ;;  %p1937_p3 = scmp.lt.u32.totalorder %s1933_s26, %s2183_s5 }
  0x27   :  { %p1939_p4 = pnand %p1937_p3, %p1934_p2 }
  0x29   :  { %1942 = shalt.err (!%p1939_p4)
}
  0x2a   :  { %s1943_s7 = scalar_lea.vmem %s49_s14, 128  ;;  %p1948_p6 = scmp.lt.s32.totalorder %s49_s14, %s49_s14 }
  0x2b   :  { %p1944_p5 = scmp.ne.s32.totalorder %s49_s14, %s1943_s7  ;;  %p1949_p7 = scmp.lt.s32.totalorder %s1943_s7, %s1943_s7 }
  0x2d   :  { %p1950_p8 = por %p1949_p7, %p1948_p6 }
  0x2f   :  { %p1951_p9 = pnand %p1950_p8, %p1944_p5 }
  0x31   :  { %1954 = shalt.err (!%p1951_p9)
}
  0x32   :  { %51 = dma.hbm_to_vmem [thread:$0]  %s2183_s5, 128, %s49_s14, [#allocation6]  }
  0x33   :  { %1977 = dma.done.wait [#allocation3], 128  }
  0x34   :  { %1978 = vsyncadd [#allocation3], 4294967168 }
  0x35   :  { %1979 = dma.done.wait [#allocation6], 640  }
  0x36   :  { %1980 = vsyncadd [#allocation6], 4294966656  ;;  %v1988_v0 = vmov 0.0|0.0   ;;  %vm1989_vm0 = vmmov 0   ;;  %v1990_v1 = vmov 0.0   ;;  %vm76_vm1 = vcmask 130048  }
  0x37   :  { %1811 = vmatprep.subr.bf16.mxu0 %v1988_v0  ;;  %1677 = vmatprep.mubr.msk.f32.mxu0 %vm1989_vm0, %v1990_v1  ;;  %v70_v2 = vld [vmem:[%s2180_s2] sm:$0xff]  ;;  %v71_v3 = vld [vmem:[%s2180_s2 + $0x8] sm:$0xff]  ;;  %vm539_vm2 = vcmask 261120   ;;  %vm575_vm3 = vcmask 1043456   ;;  %vm571_vm4 = vcmask 31744   ;;  %v566_v50 = vld [vmem:[#allocation5 + $0x8] sm:$0xff] }
  0x38   :  { %1715 = vmatprep.subr.mxu1 %v1990_v1  ;;  %1717 = vmatprep.mubr.msk.f32.mxu1 %vm1989_vm0, %v1990_v1  ;;  %v69_v4 = vld [vmem:[#allocation2] sm:$0xff]  ;;  %v81_v5 = vand.u32 4294901760, %v70_v2  ;;  %v84_v6 = vand.u32 4294901760, %v71_v3  ;;  %v1605_v25 = vld [vmem:[#allocation7] ss:$0 sm:$0xff]  ;;  %v1032_v52 = vand.u32 4294901760, %v566_v50 }
  0x39   :  { %v78_v7 = vsel %vm76_vm1, %v69_v4, 0  ;;  %v570_v30 = vld [vmem:[%s2182_s4] sm:$0xf]  ;;  %v565_v49 = vld [vmem:[#allocation5] sm:$0xff]  ;;  %v567_v55 = vld [vmem:[#allocation5 + $0x10] sm:$0xff]  ;;  %vm1587_vm5 = vcmask 57344  }
  0x3a   :  { %v147_v8 = vand.u32 4294901760, %v78_v7  ;;  %v1812_v9 = vpack.c.bf16 %v84_v6, %v81_v5  ;;  %v159_v10 = vsub.f32 %v70_v2, %v81_v5  ;;  %v166_v11 = vsub.f32 %v71_v3, %v84_v6  ;;  %v569_v31 = vld [vmem:[%s2179_s1] sm:$0xff]  ;;  %s1991_s1 = smov [#allocation8]  }
  0x3b   :  { %v577_v32 = vsel %vm575_vm3, %v570_v30, 0  ;;  %v573_v33 = vsel %vm571_vm4, %v569_v31, 0  ;;  %v1029_v51 = vand.u32 4294901760, %v565_v49  ;;  %v2125_v54 = vsub.f32 %v566_v50, %v1032_v52  ;;  %v568_v56 = vld [vmem:[#allocation5 + $0x18] sm:$0xff]  ;;  %s1595_s4 = sshll.u32 %s1991_s1, 4  ;;  %s1596_s4 = int_to_ptr.vmem [resolvable:$true] %s1595_s4 }
  0x3c   :  { %v148_v12 = vsub.f32 %v78_v7, %v147_v8  ;;  %1813 = vmatpush3.bf16.msra.mxu0 %v1812_v9  ;;  %v160_v13 = vand.u32 4294901760, %v159_v10  ;;  %v167_v14 = vand.u32 4294901760, %v166_v11  ;;  %v1818_v23 = vpack.c.bf16 %v166_v11, %v159_v10  ;;  %s1955_s15 = scalar_lea.vmem %s1596_s4, 16  ;;  %s1959_s16 = scalar_lea.vmem %s1596_s4, 32 }
  0x3d   :  { %1814 = vmatprep.subr.bf16.mxu0 %v1988_v0  ;;  %v580_v34 = vand.u32 4294901760, %v577_v32  ;;  %v645_v35 = vand.u32 4294901760, %v573_v33  ;;  %v2123_v53 = vsub.f32 %v565_v49, %v1029_v51  ;;  %v1117_v58 = vand.u32 4294901760, %v2125_v54  ;;  %p1956_p10 = scmp.ne.s32.totalorder %s1596_s4, %s1955_s15  ;;  %p1960_p11 = scmp.lt.s32.totalorder %s1596_s4, %s1596_s4 }
  0x3e   :  { %v149_v15 = vand.u32 4294901760, %v148_v12  ;;  %v161_v16 = vsub.f32 %v159_v10, %v160_v13  ;;  %v168_v17 = vsub.f32 %v166_v11, %v167_v14  ;;  %v1824_v24 = vpack.c.bf16 %v167_v14, %v160_v13  ;;  %p1961_p12 = scmp.lt.s32.totalorder %s1959_s16, %s1955_s15 }
  0x3f   :  { %1716 = vmatpush3.msra.mxu1 %v580_v34  ;;  %v657_v36 = vsub.f32 %v577_v32, %v580_v34  ;;  %v646_v37 = vsub.f32 %v573_v33, %v645_v35  ;;  %v1110_v57 = vand.u32 4294901760, %v2123_v53  ;;  %v1035_v59 = vand.u32 4294901760, %v567_v55 }
  0x40   :  { %v150_v18 = vsub.f32 %v148_v12, %v149_v15  ;;  %v162_v19 = vand.u32 4294901760, %v161_v16  ;;  %v169_v20 = vand.u32 4294901760, %v168_v17  ;;  %1720 = vmatprep.subr.mxu1 %v1990_v1  ;;  %v1038_v60 = vand.u32 4294901760, %v568_v56  ;;  %p1962_p13 = por %p1961_p12, %p1960_p11 }
  0x41   :  { %v647_v38 = vand.u32 4294901760, %v646_v37  ;;  %v658_v39 = vand.u32 4294901760, %v657_v36  ;;  %v1111_v61 = vsub.f32 %v2123_v53, %v1110_v57  ;;  %v1118_v62 = vsub.f32 %v2125_v54, %v1117_v58 }
  0x42   :  { %v151_v21 = vand.u32 4294901760, %v150_v18  ;;  %v1815_v22 = vpack.c.bf16 %v169_v20, %v162_v19  ;;  %v2131_v63 = vsub.f32 %v567_v55, %v1035_v59  ;;  %v2133_v2 = vsub.f32 %v568_v56, %v1038_v60  ;;  %p1963_p0 = pnand %p1962_p13, %p1956_p10 }
  0x43   :  { %v648_v40 = vsub.f32 %v646_v37, %v647_v38  ;;  %v659_v41 = vsub.f32 %v657_v36, %v658_v39  ;;  %v1112_v3 = vand.u32 4294901760, %v1111_v61  ;;  %v1119_v4 = vand.u32 4294901760, %v1118_v62 }
  0x44   :  { %1678 = vmatmul.mubr.f32.vlgmr.msra.gmra.mrb[0].mxu0 %v151_v21  ;;  %v1124_v5 = vand.u32 4294901760, %v2131_v63  ;;  %v1131_v6 = vand.u32 4294901760, %v2133_v2  ;;  %v1830_v7 = vpack.c.bf16 %v1032_v52, %v1029_v51  ;;  %v1833_v14 = vpack.c.bf16 %v1038_v60, %v1035_v59 }
  0x45   :  { %1816 = vmatpush3.bf16.msra.mxu0 %v1815_v22  ;;  %1684 = vmatprep.mubr.msk.f32.mxu0 %vm1989_vm0, %v1990_v1  ;;  %v649_v42 = vand.u32 4294901760, %v648_v40  ;;  %v660_v43 = vand.u32 4294901760, %v659_v41  ;;  %v1845_v16 = vpack.c.bf16 %v2133_v2, %v2131_v63  ;;  %v1854_v17 = vpack.c.bf16 %v1117_v58, %v1110_v57  ;;  %v1606_v40 = vld [vmem:[#allocation7 + $0x1] ss:$0 sm:$0xff] }
  0x46   :  { %1817 = vmatprep.subr.bf16.mxu0 %v1988_v0  ;;  %v1132_v10 = vsub.f32 %v2133_v2, %v1131_v6  ;;  %v1857_v18 = vpack.c.bf16 %v1131_v6, %v1124_v5 }
  0x47   :  { %1718 = vmatmul.mubr.f32.vlgmr.msra.gmra.mrb[0].mxu1 %v649_v42  ;;  %v1607_v42 = vld [vmem:[#allocation7 + $0x2] ss:$0 sm:$0xff] }
  0x48   :  { %1721 = vmatpush3.msra.mxu1 %v660_v43  ;;  %1722 = vmatprep.mubr.msk.f32.mxu1 %vm1989_vm0, %v1990_v1 }
  0x49   :  { %1725 = vmatprep.subr.mxu1 %v1990_v1 }
  0x4b   :  { %1723 = vmatmul.mubr.f32.vlgmr.msra.gmra.mrb[2].mxu1 %v645_v35 }
  0x4c   :  { %1685 = vmatmul.mubr.f32.vlgmr.msra.gmra.mrb[0].mxu0 %v147_v8  ;;  %1726 = vmatpush3.msra.mxu1 %v657_v36 }
  0x4d   :  { %1819 = vmatpush3.bf16.msra.mxu0 %v1818_v23  ;;  %1691 = vmatprep.mubr.msk.f32.mxu0 %vm1989_vm0, %v1990_v1 }
  0x4e   :  { %1820 = vmatprep.subr.bf16.mxu0 %v1988_v0  ;;  %1727 = vmatprep.mubr.msk.f32.mxu1 %vm1989_vm0, %v1990_v1 }
  0x4f   :  { %1730 = vmatprep.subr.mxu1 %v1990_v1  ;;  %1728 = vmatmul.mubr.f32.vlgmr.msra.gmra.mrb[4].mxu1 %v646_v37 }
  0x50   :  { %1731 = vmatpush3.msra.mxu1 %v580_v34  ;;  %1732 = vmatprep.mubr.msk.f32.mxu1 %vm1989_vm0, %v1990_v1 }
  0x51   :  { %1735 = vmatprep.subr.mxu1 %v1990_v1 }
  0x53   :  { %1733 = vmatmul.mubr.f32.vlgmr.msra.gmra.mrb[6].mxu1 %v647_v38 }
  0x54   :  { %1692 = vmatmul.mubr.f32.vlgmr.msra.gmra.mrb[0].mxu0 %v148_v12  ;;  %1736 = vmatpush3.msra.mxu1 %v658_v39  ;;  %v1133_v12 = vand.u32 4294901760, %v1132_v10 }
  0x55   :  { %1822 = vmatpush3.bf16.msra.mxu0 %v1812_v9  ;;  %1698 = vmatprep.mubr.msk.f32.mxu0 %vm1989_vm0, %v1990_v1 }
  0x56   :  { %1823 = vmatprep.subr.bf16.mxu0 %v1988_v0  ;;  %1737 = vmatprep.mubr.msk.f32.mxu1 %vm1989_vm0, %v1990_v1 }
  0x57   :  { %1740 = vmatprep.subr.mxu1 %v1990_v1  ;;  %1738 = vmatmul.mubr.f32.vlgmr.msra.gmra.mrb[8].mxu1 %v645_v35 }
  0x58   :  { %1741 = vmatpush3.msra.mxu1 %v580_v34  ;;  %1742 = vmatprep.mubr.msk.f32.mxu1 %vm1989_vm0, %v1990_v1 }
  0x59   :  { %1829 = vmatprep.subr.bf16.mxu1 %v1988_v0 }
  0x5b   :  { %1743 = vmatmul.mubr.f32.vlgmr.msra.gmra.mrb[10].mxu1 %v645_v35 }
  0x5c   :  { %1699 = vmatmul.mubr.f32.vlgmr.msra.gmra.mrb[0].mxu0 %v149_v15  ;;  %1753 = vmatprep.mubr.msk.f32.mxu1 %vm1989_vm0, %v1990_v1  ;;  %v1842_v15 = vpack.c.bf16 %v2125_v54, %v2123_v53 }
  0x5d   :  { %1825 = vmatpush3.bf16.msra.mxu0 %v1824_v24  ;;  %1705 = vmatprep.mubr.msk.f32.mxu0 %vm1989_vm0, %v1990_v1 }
  0x5e   :  { %1826 = vmatprep.subr.bf16.mxu0 %v1988_v0  ;;  %1831 = vmatpush3.bf16.msra.mxu1 %v1830_v7 }
  0x5f   :  { %1832 = vmatprep.subr.bf16.mxu1 %v1988_v0 }
  0x62   :  { %1834 = vmatpush3.bf16.msra.mxu1 %v1833_v14 }
  0x63   :  { %1841 = vmatprep.subr.bf16.mxu1 %v1988_v0 }
  0x64   :  { %1706 = vmatmul.mubr.f32.vlgmr.msra.gmra.mrb[0].mxu0 %v147_v8 }
  0x65   :  { %1828 = vmatpush3.bf16.msra.mxu0 %v1812_v9  ;;  %1712 = vmatprep.mubr.msk.f32.mxu0 %vm1989_vm0, %v1990_v1  ;;  %v1125_v9 = vsub.f32 %v2131_v63, %v1124_v5 }
  0x66   :  { %1835 = vmatprep.subr.bf16.mxu0 %v1988_v0 }
  0x67   :  { %v1126_v11 = vand.u32 4294901760, %v1125_v9 }
  0x69   :  { %v1839_v13 = vpack.c.bf16 %v1133_v12, %v1126_v11 }
  0x6c   :  { %1713 = vmatmul.mubr.f32.vlgmr.msra.gmra.mrb[0].mxu0 %v147_v8  ;;  %v1836_v8 = vpack.c.bf16 %v1119_v4, %v1112_v3 }
  0x6d   :  { %1764 = vmatprep.mubr.msk.f32.mxu0 %vm1989_vm0, %v1990_v1 }
  0x6e   :  { %1837 = vmatpush3.bf16.msra.mxu0 %v1836_v8 }
  0x6f   :  { %1838 = vmatprep.subr.bf16.mxu0 %v1988_v0 }
  0x72   :  { %1840 = vmatpush3.bf16.msra.mxu0 %v1839_v13 }
  0x73   :  { %1847 = vmatprep.subr.bf16.mxu0 %v1988_v0 }
 0x11a   :  { %v651_v19 = vpop.f32.mrb[0].mxu1 }
 0x11b   :  { %v1719_v20 = vpop.f32.mrb[1].mxu1 }
 0x11c   :  { %v1610_v20 = vld [vmem:[#allocation7 + $0x5] ss:$0 sm:$0xff] }
 0x11e   :  { %v727_v21 = vpop.f32.mrb[2].mxu1 }
 0x11f   :  { %v728_v22 = vadd.f32 %v727_v21, %v651_v19  ;;  %v1724_v23 = vpop.f32.mrb[3].mxu1 }
 0x120   :  { %v1611_v23 = vld [vmem:[#allocation7 + $0x6] ss:$0 sm:$0xff] }
 0x122   :  { %v801_v24 = vpop.f32.mrb[4].mxu1 }
 0x13f   :  { %v535_v26 = vpop.f32.mrb[0].mxu0 }
 0x140   :  { %v1865_v27 = vadd.f32 %v1605_v25, %v535_v26  ;;  %v1714_v28 = vpop.f32.mrb[1].mxu0  ;;  %v802_v25 = vadd.f32 %v801_v24, %v728_v22  ;;  %v1729_v26 = vpop.f32.mrb[5].mxu1 }
 0x142   :  { %v540_v29 = vsel %vm539_vm2, %v1865_v27, 0.0 }
 0x143   :  { %541 = vadd.xlane.f32.xlu0 %v540_v29 }
 0x1d0   :  { %v542_v44 = vpop.xlane.xlu0 %541 }
 0x1d1   :  { %v544_v45 = vmul.f32 0.03125, %v542_v44 }
 0x1d3   :  { %v2118_v46 = vsub.f32 %v1865_v27, %v544_v45  ;;  %v875_v27 = vpop.f32.mrb[6].mxu1 }
 0x1d4   :  { %v876_v28 = vadd.f32 %v875_v27, %v802_v25  ;;  %v1734_v29 = vpop.f32.mrb[7].mxu1  ;;  %v1612_v27 = vld [vmem:[#allocation7 + $0x7] ss:$0 sm:$0xff] }
 0x1d5   :  { %v546_v47 = vmul.f32 %v2118_v46, %v2118_v46  ;;  %v949_v30 = vpop.f32.mrb[8].mxu1 }
 0x1d6   :  { %v950_v31 = vadd.f32 %v949_v30, %v876_v28  ;;  %v1739_v32 = vpop.f32.mrb[9].mxu1 }
 0x1d7   :  { %v547_v48 = vsel %vm539_vm2, %v546_v47, 0.0  ;;  %v1021_v33 = vpop.f32.mrb[10].mxu1 }
 0x1d8   :  { %548 = vadd.xlane.f32.xlu0 %v547_v48  ;;  %v1022_v34 = vadd.f32 %v1021_v33, %v950_v31  ;;  %v1744_v35 = vpop.f32.mrb[11].mxu1 }
 0x265   :  { %v549_v36 = vpop.xlane.xlu0 %548 }
 0x266   :  { %v550_v37 = vmul.f32 0.03125, %v549_v36 }
 0x268   :  { %v551_v38 = vadd.f32 1e-05, %v550_v37 }
 0x26a   :  { %1885 = vrsqrt.f32 %v551_v38 }
 0x274   :  { %v1886_v39 = vpop.eup %1885 }
 0x275   :  { %v553_v41 = vmul.f32 %v1886_v39, %v2118_v46 }
 0x277   :  { %v558_v43 = vmul.f32 %v1606_v40, %v553_v41 }
 0x279   :  { %v563_v44 = vadd.f32 %v1607_v42, %v558_v43 }
 0x27b   :  { %v564_v45 = vmax.f32 %v563_v44, 0.0 }
 0x27d   :  { %v1026_v47 = vsel %vm539_vm2, %v564_v45, 0 }
 0x27e   :  { %v1097_v48 = vand.u32 4294901760, %v1026_v47 }
 0x280   :  { %v1098_v49 = vsub.f32 %v1026_v47, %v1097_v48  ;;  %1765 = vmatmul.mubr.f32.vlgmr.msra.gmra.mrb[2].mxu0 %v1097_v48 }
 0x281   :  { %1849 = vmatpush3.bf16.msra.mxu0 %v1830_v7  ;;  %1786 = vmatprep.mubr.msk.f32.mxu0 %vm1989_vm0, %v1990_v1 }
 0x282   :  { %1850 = vmatprep.subr.bf16.mxu0 %v1988_v0  ;;  %v1099_v50 = vand.u32 4294901760, %v1098_v49 }
 0x284   :  { %v1100_v51 = vsub.f32 %v1098_v49, %v1099_v50 }
 0x285   :  { %1852 = vmatpush3.bf16.msra.mxu0 %v1833_v14 }
 0x286   :  { %1859 = vmatprep.subr.bf16.mxu0 %v1988_v0  ;;  %v1101_v46 = vand.u32 4294901760, %v1100_v51 }
 0x288   :  { %1787 = vmatmul.mubr.f32.vlgmr.msra.gmra.mrb[4].mxu0 %v1099_v50  ;;  %1754 = vmatmul.mubr.f32.vlgmr.msra.gmra.mrb[12].mxu1 %v1101_v46 }
 0x289   :  { %1843 = vmatpush3.bf16.msra.mxu1 %v1842_v15  ;;  %1861 = vmatpush3.bf16.msra.mxu0 %v1830_v7 }
 0x28a   :  { %1844 = vmatprep.subr.bf16.mxu1 %v1988_v0  ;;  %1862 = vmatprep.subr.bf16.mxu0 %v1988_v0 }
 0x28b   :  { %1775 = vmatprep.mubr.msk.f32.mxu1 %vm1989_vm0, %v1990_v1  ;;  %1808 = vmatprep.mubr.msk.f32.mxu0 %vm1989_vm0, %v1990_v1 }
 0x28d   :  { %1846 = vmatpush3.bf16.msra.mxu1 %v1845_v16  ;;  %1864 = vmatpush3.bf16.msra.mxu0 %v1833_v14 }
 0x28e   :  { %1853 = vmatprep.subr.bf16.mxu1 %v1988_v0 }
 0x290   :  { %1776 = vmatmul.mubr.f32.vlgmr.msra.gmra.mrb[14].mxu1 %v1098_v49  ;;  %1809 = vmatmul.mubr.f32.vlgmr.msra.gmra.mrb[6].mxu0 %v1097_v48 }
 0x291   :  { %1855 = vmatpush3.bf16.msra.mxu1 %v1854_v17  ;;  %1797 = vmatprep.mubr.msk.f32.mxu1 %vm1989_vm0, %v1990_v1 }
 0x292   :  { %1856 = vmatprep.subr.bf16.mxu1 %v1988_v0  ;;  %v1608_v0 = vld [vmem:[#allocation7 + $0x3] ss:$0 sm:$0xff] }
 0x295   :  { %1858 = vmatpush3.bf16.msra.mxu1 %v1857_v18  ;;  %v1609_v18 = vld [vmem:[#allocation7 + $0x4] ss:$0 sm:$0xff] }
 0x298   :  { %1798 = vmatmul.mubr.f32.vlgmr.msra.gmra.mrb[16].mxu1 %v1097_v48 }
 0x353   :  { %v1194_v52 = vpop.f32.mrb[2].mxu0 }
 0x354   :  { %v1766_v53 = vpop.f32.mrb[3].mxu0 }
 0x35b   :  { %v1351_v54 = vpop.f32.mrb[4].mxu0  ;;  %v1103_v55 = vpop.f32.mrb[12].mxu1 }
 0x35c   :  { %v1104_v56 = vadd.f32 %v1103_v55, %v1022_v34  ;;  %v1788_v57 = vpop.f32.mrb[5].mxu0  ;;  %v1755_v58 = vpop.f32.mrb[13].mxu1 }
 0x35e   :  { %v1195_v59 = vadd.f32 %v1194_v52, %v1104_v56 }
 0x363   :  { %v1274_v60 = vpop.f32.mrb[14].mxu1  ;;  %v1509_v61 = vpop.f32.mrb[6].mxu0 }
 0x364   :  { %v1275_v62 = vadd.f32 %v1274_v60, %v1195_v59  ;;  %v1777_v63 = vpop.f32.mrb[15].mxu1  ;;  %v1810_v2 = vpop.f32.mrb[7].mxu0 }
 0x366   :  { %v1352_v3 = vadd.f32 %v1351_v54, %v1275_v62 }
 0x36b   :  { %v1434_v4 = vpop.f32.mrb[16].mxu1 }
 0x36c   :  { %v1435_v1 = vadd.f32 %v1434_v4, %v1352_v3  ;;  %v1799_v5 = vpop.f32.mrb[17].mxu1 }
 0x36e   :  { %v1510_v6 = vadd.f32 %v1509_v61, %v1435_v1 }
 0x370   :  { %v1517_v7 = vadd.f32 %v1608_v0, %v1510_v6 }
 0x372   :  { %v1518_v8 = vsel %vm539_vm2, %v1517_v7, 0.0 }
 0x373   :  { %1519 = vadd.xlane.f32.xlu1 %v1518_v8 }
 0x400   :  { %v1520_v9 = vpop.xlane.xlu1 %1519 }
 0x401   :  { %v1521_v10 = vmul.f32 0.03125, %v1520_v9 }
 0x403   :  { %v1522_v11 = vsub.f32 %v1517_v7, %v1521_v10 }
 0x405   :  { %v1523_v12 = vmul.f32 %v1522_v11, %v1522_v11 }
 0x407   :  { %v1524_v13 = vsel %vm539_vm2, %v1523_v12, 0.0 }
 0x408   :  { %1525 = vadd.xlane.f32.xlu1 %v1524_v13 }
 0x495   :  { %v1526_v14 = vpop.xlane.xlu1 %1525 }
 0x496   :  { %v1527_v15 = vmul.f32 0.03125, %v1526_v14 }
 0x498   :  { %v1528_v16 = vadd.f32 1e-05, %v1527_v15 }
 0x49a   :  { %1887 = vrsqrt.f32 %v1528_v16 }
 0x4a4   :  { %v1888_v17 = vpop.eup %1887 }
 0x4a5   :  { %v1530_v19 = vmul.f32 %v1888_v17, %v1522_v11 }
 0x4a7   :  { %v1535_v21 = vmul.f32 %v1609_v18, %v1530_v19 }
 0x4a9   :  { %v1540_v22 = vadd.f32 %v1610_v20, %v1535_v21 }
 0x4ab   :  { %v1541_v24 = vmax.f32 %v1540_v22, 0.0 }
 0x4ad   :  { %v1546_v25 = vmul.f32 %v1611_v23, %v1541_v24 }
 0x4af   :  { %v1547_v26 = vsel %vm539_vm2, %v1546_v25, 0.0 }
 0x4b0   :  { %1548 = vadd.xlane.f32.xlu0 %v1547_v26 }
 0x53d   :  { %v1549_v28 = vpop.xlane.xlu0 %1548 }
 0x53e   :  { %v1554_v29 = vadd.f32 %v1612_v27, %v1549_v28 }
 0x540   :  { %1555 = vxpose.xlu1.b32.start.end [1/1] (short) (narrow) %v1554_v29, 8 }
 0x5c0   :  { %v1571_v30 = vpop.trf.xlu1 }
 0x5c1   :  { %1588 = vst.msk [vmem:[#allocation8] sm:$0x1] %vm1587_vm5, %v1571_v30 }
 0x5c2   :  { %1966 = shalt.err (!%p1963_p0)
}
 0x5c3   :  { %s1967_s19 = scalar_lea.hbm %s2184_s6, 16 }
 0x5c4   :  { %p1968_p1 = scmp.ne.s32.totalorder %s2184_s6, %s1967_s19  ;;  %p1971_p2 = scmp.lt.u32.totalorder %s1967_s19, %s2184_s6 }
 0x5c6   :  { %p1973_p3 = pnand %p1971_p2, %p1968_p1 }
 0x5c8   :  { %1976 = shalt.err (!%p1973_p3)
}
 0x5c9   :  { %1598 = dma.vmem_to_hbm [thread:$0]  %s1596_s4, 16, %s2184_s6, [#allocation4]  }
 0x5ca   :  { %1981 = dma.done.wait [#allocation4], 16  }
 0x5cb   :  { %1982 = vsyncadd [#allocation4], 4294967280 }
 0x5cc   :  { %1602 = vsyncpa [#allocation3], 1 }
 0x5cd   :  { %1603 = vsyncpa [#allocation6], 1 }
 0x5ce   :  { %1604 = vsyncpa [#allocation4], 1 }

</bundles_post_ra>
